<compile_context>
chip_gen: v6e
topology: v6e:2x2x1
jax: 0.10.0
libtpu: 0.0.40
codegen_flags: <defaults>
</compile_context>

<pallas_src>
import functools

import jax
import jax.numpy as jnp
from jax import lax
from jax.experimental import pallas as pl
from jax.experimental.pallas import tpu as pltpu

LANES = 128  # lane width (last dim of every block)


def _chip_profile():
    """Returns (num_tensorcores, bytes per input block, vmem_limit_bytes or None)."""
    kind = ""
    try:
        kind = jax.devices()[0].device_kind.lower()
    except Exception:
        pass
    if "7" in kind:
        # v7x-class: 2 TensorCores/chip, 64 MiB physical VMEM, ~3.2 TB/s HBM.
        # 4 MiB/input block -> 16 MiB pipelined (2 inputs x 2 buffers); give headroom.
        return 2, 4 << 20, 48 << 20
    if "v6" in kind or "6e" in kind:
        # v6e: 1 TensorCore, 128 MiB VMEM; 4 MiB blocks fit the 32 MiB scoped default.
        return 1, 4 << 20, None
    # v5e and unknown parts: stay under the 16 MiB scoped-VMEM default.
    return 1, 2 << 20, None


def _dice_kernel(p_ref, t_ref, inter_out, union_out, inter_acc, union_acc, *,
                 tile_rows, tiles_per_split, valid_rows, full_tiles, needs_mask):
    """Accumulate per-lane partial sums; emit one (8,128) partial per split."""
    s = pl.program_id(0)           # split index (sharded across TCs on v7x)
    i = pl.program_id(1)           # row-tile index within split ("arbitrary")

    @pl.when(i == 0)
    def _():
        inter_acc[...] = jnp.zeros_like(inter_acc)
        union_acc[...] = jnp.zeros_like(union_acc)

    def accumulate(p, t):
        # Fold the (tile_rows, 128) tile into (8, 128) per-lane partials with
        # plain vreg adds; no per-step cross-lane/XLU reduce, no scalar RMW.
        inter_acc[...] += jnp.sum((p * t).reshape(-1, 8, LANES), axis=0)
        union_acc[...] += jnp.sum((p + t).reshape(-1, 8, LANES), axis=0)  # == sum(p)+sum(t)

    if needs_mask:
        logical = s * tiles_per_split + i   # logical row-tile index

        @pl.when(logical < full_tiles)      # fully in-bounds tiles: fast path
        def _():
            accumulate(p_ref[...].astype(jnp.float32),
                       t_ref[...].astype(jnp.float32))

        @pl.when(logical >= full_tiles)     # ragged / duplicated tail tiles
        def _():
            row = logical * tile_rows + lax.broadcasted_iota(
                jnp.int32, (tile_rows, LANES), 0)
            keep = row < valid_rows
            # Zero p and t BEFORE multiply/add: OOB garbage may be NaN/Inf, and
            # NaN * 0 would otherwise poison the accumulators.
            p = jnp.where(keep, p_ref[...].astype(jnp.float32), 0.0)
            t = jnp.where(keep, t_ref[...].astype(jnp.float32), 0.0)
            accumulate(p, t)
    else:
        accumulate(p_ref[...].astype(jnp.float32),
                   t_ref[...].astype(jnp.float32))

    @pl.when(i == pl.num_programs(1) - 1)
    def _():
        inter_out[...] = inter_acc[...].reshape(1, 8, LANES)
        union_out[...] = union_acc[...].reshape(1, 8, LANES)


def dice_coefficient(prediction, target, eps=1e-06):
    assert prediction.shape == target.shape
    n = prediction.size
    itemsize = int(jnp.dtype(prediction.dtype).itemsize)
    sub = max(8, 32 // max(itemsize, 1))      # sublane packing multiple for dtype

    num_cores, tile_bytes, vmem_limit = _chip_profile()

    p_flat = prediction.reshape(-1)
    t_flat = target.reshape(-1)

    # Tiny tail pad (<= sub*128 elements) so rows is sublane-aligned and every
    # block fits inside the array; typical NCHW shapes hit the zero-pad path.
    pad = (-n) % (sub * LANES)
    if pad:
        p_flat = jnp.pad(p_flat, (0, pad))
        t_flat = jnp.pad(t_flat, (0, pad))
    rows = p_flat.size // LANES
    p2d = p_flat.reshape(rows, LANES)
    t2d = t_flat.reshape(rows, LANES)

    # Constant-BYTE row tile (dtype-independent HBM step size), rounded to the
    # dtype's sublane multiple, never larger than the array.
    cap_rows = max(sub, (tile_bytes // (LANES * itemsize)) // sub * sub)
    tile_rows = min(cap_rows, rows)

    num_row_blocks = -(-rows // tile_rows)                  # cdiv
    num_splits = min(num_cores, num_row_blocks)             # 1 on v5e/v6e, up to 2 on v7x
    tiles_per_split = -(-num_row_blocks // num_splits)      # cdiv
    full_tiles = rows // tile_rows                          # fully-valid tiles
    needs_mask = (num_splits * tiles_per_split * tile_rows) > rows

    kernel = functools.partial(
        _dice_kernel,
        tile_rows=tile_rows,
        tiles_per_split=tiles_per_split,
        valid_rows=rows,
        full_tiles=full_tiles,
        needs_mask=needs_mask,
    )

    def in_map(s, i):
        # Clamp so duplicated tail tiles never DMA a block that starts out of
        # bounds; their contribution is masked to zero inside the kernel.
        return (jnp.minimum(s * tiles_per_split + i, num_row_blocks - 1), 0)

    cost = pl.CostEstimate(
        flops=4 * n,
        transcendentals=0,
        bytes_accessed=2 * n * itemsize + 2 * num_splits * 8 * LANES * 4,
    )

    def run(dim_sem):
        return pl.pallas_call(
            kernel,
            out_shape=(
                jax.ShapeDtypeStruct((num_splits, 8, LANES), jnp.float32),
                jax.ShapeDtypeStruct((num_splits, 8, LANES), jnp.float32),
            ),
            grid_spec=pltpu.PrefetchScalarGridSpec(
                num_scalar_prefetch=0,
                grid=(num_splits, tiles_per_split),
                in_specs=[
                    pl.BlockSpec((tile_rows, LANES), in_map),
                    pl.BlockSpec((tile_rows, LANES), in_map),
                ],
                out_specs=(
                    pl.BlockSpec((1, 8, LANES), lambda s, i: (s, 0, 0)),
                    pl.BlockSpec((1, 8, LANES), lambda s, i: (s, 0, 0)),
                ),
                scratch_shapes=[
                    pltpu.VMEM((8, LANES), jnp.float32),
                    pltpu.VMEM((8, LANES), jnp.float32),
                ],
            ),
            compiler_params=pltpu.CompilerParams(
                dimension_semantics=dim_sem,
                vmem_limit_bytes=vmem_limit),
            cost_estimate=cost,
        )(p2d, t2d)

    if num_splits > 1:
        # v7x: only CORE_PARALLEL actually shards the grid across the 2 TCs
        # (each core has its own VMEM scratch and writes its own (s,8,128)
        # output slice). Fall back to plain "parallel" if it is rejected.
        try:
            inter_out, union_out = run((pltpu.CORE_PARALLEL, pltpu.ARBITRARY))
        except Exception:
            inter_out, union_out = run(("parallel", "arbitrary"))
    else:
        inter_out, union_out = run(("arbitrary", "arbitrary"))

    # Tiny cross-split / cross-lane combine + final scalar math
    # (2 * intersection / clamp(union, min=eps)), matching torch semantics.
    intersection = jnp.sum(inter_out)
    union = jnp.maximum(jnp.sum(union_out), jnp.float32(eps))
    return 2.0 * intersection / union


def dice_coefficient_ref(prediction, target, eps=1e-06):
    p = prediction.astype(jnp.float32)
    t = target.astype(jnp.float32)
    intersection = jnp.sum(p * t)
    union = jnp.sum(p) + jnp.sum(t)
    return 2.0 * intersection / jnp.maximum(union, eps)


if __name__ == "__main__":
    key = jax.random.PRNGKey(0)
    k1, k2, k3, k4 = jax.random.split(key, 4)

    # NCHW, small shapes consistent with a segmentation prediction/target pair.
    prediction = jax.random.uniform(k1, (2, 4, 16, 16), dtype=jnp.float32)
    target = (jax.random.uniform(k2, (2, 4, 16, 16)) > 0.5).astype(jnp.float32)
    out = jax.block_until_ready(dice_coefficient(prediction, target))
    ref = dice_coefficient_ref(prediction, target)
    assert jnp.allclose(out, ref, rtol=1e-5, atol=1e-6), (out, ref)

    # Ragged (non lane-aligned) shape exercising the zero-pad tail path.
    pred2 = jax.random.uniform(k3, (3, 5, 7, 11), dtype=jnp.float32)
    targ2 = (jax.random.uniform(k4, (3, 5, 7, 11)) > 0.5).astype(jnp.float32)
    out2 = jax.block_until_ready(dice_coefficient(pred2, targ2))
    ref2 = dice_coefficient_ref(pred2, targ2)
    assert jnp.allclose(out2, ref2, rtol=1e-5, atol=1e-6), (out2, ref2)

    print("KERNEL_OK")
</pallas_src>

<mosaic_0001>
module attributes {stable_mosaic.version = 11 : i64} {
  func.func @_dice_kernel(%arg0: i32, %arg1: i32, %arg2: memref<16x128xf32, #tpu.memory_space<vmem>>, %arg3: memref<16x128xf32, #tpu.memory_space<vmem>>, %arg4: memref<1x8x128xf32, #tpu.memory_space<vmem>>, %arg5: memref<1x8x128xf32, #tpu.memory_space<vmem>>, %arg6: memref<8x128xf32, #tpu.memory_space<vmem>>, %arg7: memref<8x128xf32, #tpu.memory_space<vmem>>) attributes {dimension_semantics = [#tpu.dimension_semantics<arbitrary>, #tpu.dimension_semantics<arbitrary>], iteration_bounds = array<i64: 1, 1>, scalar_prefetch = 0 : i64, scratch_operands = 2 : i64, tpu.core_type = #tpu.core_type<tc>, window_params = [{transform_indices = @transform_0, window_bounds = array<i64: 16, 128>}, {transform_indices = @transform_1, window_bounds = array<i64: 16, 128>}, {transform_indices = @transform_2, window_bounds = array<i64: 1, 8, 128>}, {transform_indices = @transform_3, window_bounds = array<i64: 1, 8, 128>}]} {
    %c0_i32 = arith.constant 0 : i32
    %0 = arith.cmpi eq, %arg1, %c0_i32 : i32
    %1 = arith.extui %0 : i1 to i32
    %c0_i32_0 = arith.constant 0 : i32
    %2 = arith.cmpi ne, %1, %c0_i32_0 : i32
    scf.if %2 {
      %cst_15 = arith.constant 0.000000e+00 : f32
      %20 = vector.broadcast %cst_15 : f32 to vector<8x128xf32>
      %c0_16 = arith.constant 0 : index
      %c0_17 = arith.constant 0 : index
      %21 = vector.load %arg6[%c0_16, %c0_17] : memref<8x128xf32, #tpu.memory_space<vmem>>, vector<8x128xf32>
      tpu.vector_store %arg6[%c0_16, %c0_17], %20 {strides = array<i32>} : memref<8x128xf32, #tpu.memory_space<vmem>>, vector<8x128xf32>,
      %cst_18 = arith.constant 0.000000e+00 : f32
      %22 = vector.broadcast %cst_18 : f32 to vector<8x128xf32>
      %c0_19 = arith.constant 0 : index
      %c0_20 = arith.constant 0 : index
      %23 = vector.load %arg7[%c0_19, %c0_20] : memref<8x128xf32, #tpu.memory_space<vmem>>, vector<8x128xf32>
      tpu.vector_store %arg7[%c0_19, %c0_20], %22 {strides = array<i32>} : memref<8x128xf32, #tpu.memory_space<vmem>>, vector<8x128xf32>,
    } else {
    }
    %c0 = arith.constant 0 : index
    %c0_1 = arith.constant 0 : index
    %3 = vector.load %arg2[%c0, %c0_1] : memref<16x128xf32, #tpu.memory_space<vmem>>, vector<16x128xf32>
    %c0_2 = arith.constant 0 : index
    %c0_3 = arith.constant 0 : index
    %4 = vector.load %arg3[%c0_2, %c0_3] : memref<16x128xf32, #tpu.memory_space<vmem>>, vector<16x128xf32>
    %c0_4 = arith.constant 0 : index
    %c0_5 = arith.constant 0 : index
    %5 = vector.load %arg6[%c0_4, %c0_5] : memref<8x128xf32, #tpu.memory_space<vmem>>, vector<8x128xf32>
    %6 = arith.mulf %3, %4 : vector<16x128xf32>
    %7 = vector.shape_cast %6 : vector<16x128xf32> to vector<2x8x128xf32>
    %cst = arith.constant dense<0.000000e+00> : vector<8x128xf32>
    %8 = vector.multi_reduction <add>, %7, %cst [0] : vector<2x8x128xf32> to vector<8x128xf32>
    %9 = arith.addf %5, %8 : vector<8x128xf32>
    %c0_6 = arith.constant 0 : index
    %c0_7 = arith.constant 0 : index
    %10 = vector.load %arg6[%c0_6, %c0_7] : memref<8x128xf32, #tpu.memory_space<vmem>>, vector<8x128xf32>
    tpu.vector_store %arg6[%c0_6, %c0_7], %9 {strides = array<i32>} : memref<8x128xf32, #tpu.memory_space<vmem>>, vector<8x128xf32>,
    %c0_8 = arith.constant 0 : index
    %c0_9 = arith.constant 0 : index
    %11 = vector.load %arg7[%c0_8, %c0_9] : memref<8x128xf32, #tpu.memory_space<vmem>>, vector<8x128xf32>
    %12 = arith.addf %3, %4 : vector<16x128xf32>
    %13 = vector.shape_cast %12 : vector<16x128xf32> to vector<2x8x128xf32>
    %cst_10 = arith.constant dense<0.000000e+00> : vector<8x128xf32>
    %14 = vector.multi_reduction <add>, %13, %cst_10 [0] : vector<2x8x128xf32> to vector<8x128xf32>
    %15 = arith.addf %11, %14 : vector<8x128xf32>
    %c0_11 = arith.constant 0 : index
    %c0_12 = arith.constant 0 : index
    %16 = vector.load %arg7[%c0_11, %c0_12] : memref<8x128xf32, #tpu.memory_space<vmem>>, vector<8x128xf32>
    tpu.vector_store %arg7[%c0_11, %c0_12], %15 {strides = array<i32>} : memref<8x128xf32, #tpu.memory_space<vmem>>, vector<8x128xf32>,
    %c0_i32_13 = arith.constant 0 : i32
    %17 = arith.cmpi eq, %arg1, %c0_i32_13 : i32
    %18 = arith.extui %17 : i1 to i32
    %c0_i32_14 = arith.constant 0 : i32
    %19 = arith.cmpi ne, %18, %c0_i32_14 : i32
    scf.if %19 {
      %c0_15 = arith.constant 0 : index
      %c0_16 = arith.constant 0 : index
      %20 = vector.load %arg6[%c0_15, %c0_16] : memref<8x128xf32, #tpu.memory_space<vmem>>, vector<8x128xf32>
      %21 = vector.shape_cast %20 : vector<8x128xf32> to vector<1x8x128xf32>
      %c0_17 = arith.constant 0 : index
      %c0_18 = arith.constant 0 : index
      %c0_19 = arith.constant 0 : index
      %22 = vector.load %arg4[%c0_17, %c0_18, %c0_19] : memref<1x8x128xf32, #tpu.memory_space<vmem>>, vector<1x8x128xf32>
      tpu.vector_store %arg4[%c0_17, %c0_18, %c0_19], %21 {strides = array<i32>} : memref<1x8x128xf32, #tpu.memory_space<vmem>>, vector<1x8x128xf32>,
      %c0_20 = arith.constant 0 : index
      %c0_21 = arith.constant 0 : index
      %23 = vector.load %arg7[%c0_20, %c0_21] : memref<8x128xf32, #tpu.memory_space<vmem>>, vector<8x128xf32>
      %24 = vector.shape_cast %23 : vector<8x128xf32> to vector<1x8x128xf32>
      %c0_22 = arith.constant 0 : index
      %c0_23 = arith.constant 0 : index
      %c0_24 = arith.constant 0 : index
      %25 = vector.load %arg5[%c0_22, %c0_23, %c0_24] : memref<1x8x128xf32, #tpu.memory_space<vmem>>, vector<1x8x128xf32>
      tpu.vector_store %arg5[%c0_22, %c0_23, %c0_24], %24 {strides = array<i32>} : memref<1x8x128xf32, #tpu.memory_space<vmem>>, vector<1x8x128xf32>,
    } else {
    }
    return
  }
  func.func @transform_0(%arg0: i32, %arg1: i32) -> (i32, i32) {
    %c1_i32 = arith.constant 1 : i32
    %0 = arith.muli %arg0, %c1_i32 : i32
    %1 = arith.addi %0, %arg1 : i32
    %c0_i32 = arith.constant 0 : i32
    %2 = arith.minsi %1, %c0_i32 : i32
    %c0_i32_0 = arith.constant 0 : i32
    %c0_i32_1 = arith.constant 0 : i32
    return %2, %c0_i32_0 : i32, i32
  }
  func.func @transform_1(%arg0: i32, %arg1: i32) -> (i32, i32) {
    %c1_i32 = arith.constant 1 : i32
    %0 = arith.muli %arg0, %c1_i32 : i32
    %1 = arith.addi %0, %arg1 : i32
    %c0_i32 = arith.constant 0 : i32
    %2 = arith.minsi %1, %c0_i32 : i32
    %c0_i32_0 = arith.constant 0 : i32
    %c0_i32_1 = arith.constant 0 : i32
    return %2, %c0_i32_0 : i32, i32
  }
  func.func @transform_2(%arg0: i32, %arg1: i32) -> (i32, i32, i32) {
    %c0_i32 = arith.constant 0 : i32
    %c0_i32_0 = arith.constant 0 : i32
    %c0_i32_1 = arith.constant 0 : i32
    return %arg0, %c0_i32, %c0_i32_0 : i32, i32, i32
  }
  func.func @transform_3(%arg0: i32, %arg1: i32) -> (i32, i32, i32) {
    %c0_i32 = arith.constant 0 : i32
    %c0_i32_0 = arith.constant 0 : i32
    %c0_i32_1 = arith.constant 0 : i32
    return %arg0, %c0_i32, %c0_i32_0 : i32, i32, i32
  }
}

</mosaic_0001>

<bundles_post_ra>
// kernel: tpu_custom_call.1
= control target key start
LH: loop header
LB: loop body
LE: loop exit
PB: predicated region body
PF: predicated region fallthrough
CT: control target
= control target key end

     0   :  { %9 = vsyncpa [#allocation5], 0  ;;  %s258_s0 = inlined_call_operand.hbm [shape: f32[16,128], index: 0, kind: input, shape index: {}]   ;;  %s259_s1 = inlined_call_operand.hbm [shape: f32[16,128], index: 1, kind: input, shape index: {}]   ;;  %s260_s2 = inlined_call_operand.hbm [shape: f32[1,8,128], index: 2, kind: output, shape index: {0}]   ;;  %s261_s3 = inlined_call_operand.hbm [shape: f32[1,8,128], index: 3, kind: output, shape index: {1}]  }
   0x1   :  { %10 = vsyncpa [#allocation8], 0 }
   0x2   :  { %11 = vsyncpa [#allocation6], 0 }
   0x3   :  { %12 = vsyncpa [#allocation11], 0  ;;  %s220_s12 = smov [#allocation4]  }
   0x4   :  { %s24_s13 = sshll.u32 %s220_s12, 4  ;;  %s25_s13 = int_to_ptr.vmem [resolvable:$true] %s24_s13 }
   0x5   :  { %s140_s14 = scalar_lea.vmem %s25_s13, 256  ;;  %p145_p1 = scmp.lt.s32.totalorder %s25_s13, %s25_s13 }
   0x6   :  { %p141_p0 = scmp.ne.s32.totalorder %s25_s13, %s140_s14  ;;  %p146_p2 = scmp.lt.s32.totalorder %s140_s14, %s140_s14 }
   0x8   :  { %p147_p3 = por %p146_p2, %p145_p1 }
   0xa   :  { %p148_p4 = pnand %p147_p3, %p141_p0 }
   0xc   :  { %151 = shalt.err (!%p148_p4)
}
   0xd   :  { %s221_s15 = smov 128   ;;  %s222_s16 = smov 8  }
   0xe   :  { %30 = dma.hbm_to_vmem [thread:$0]  %s258_s0, 256, %s25_s13, [#allocation5], %s221_s15, %s221_s15, %s222_s16  }
   0xf   :  { %s223_s19 = smov [#allocation7]  }
  0x10   :  { %s42_s20 = sshll.u32 %s223_s19, 4  ;;  %s43_s20 = int_to_ptr.vmem [resolvable:$true] %s42_s20 }
  0x11   :  { %s160_s21 = scalar_lea.vmem %s43_s20, 256  ;;  %p165_p6 = scmp.lt.s32.totalorder %s43_s20, %s43_s20 }
  0x12   :  { %p161_p5 = scmp.ne.s32.totalorder %s43_s20, %s160_s21  ;;  %p166_p7 = scmp.lt.s32.totalorder %s160_s21, %s160_s21 }
  0x14   :  { %p167_p8 = por %p166_p7, %p165_p6 }
  0x16   :  { %p168_p9 = pnand %p167_p8, %p161_p5 }
  0x18   :  { %171 = shalt.err (!%p168_p9)
}
  0x19   :  { %48 = dma.hbm_to_vmem [thread:$0]  %s259_s1, 256, %s43_s20, [#allocation8], %s221_s15, %s221_s15, %s222_s16  }
  0x1a   :  { %212 = dma.done.wait [#allocation5], 256  }
  0x1b   :  { %213 = vsyncadd [#allocation5], 4294967040 }
  0x1c   :  { %214 = dma.done.wait [#allocation8], 256  }
  0x1d   :  { %215 = vsyncadd [#allocation8], 4294967040  ;;  %v69_v0 = vld [vmem:[#allocation4] sm:$0xff]  ;;  %v70_v1 = vld [vmem:[#allocation4 + $0x8] sm:$0xff]  ;;  %s224_s0 = smov [#allocation9]   ;;  %s225_s25 = smov [#allocation10]  }
  0x1e   :  { %v71_v2 = vld [vmem:[#allocation7] sm:$0xff]  ;;  %v72_v3 = vld [vmem:[#allocation7 + $0x8] sm:$0xff]  ;;  %s98_s24 = sshll.u32 %s224_s0, 4  ;;  %s108_s26 = sshll.u32 %s225_s25, 4  ;;  %s99_s24 = int_to_ptr.vmem [resolvable:$true] %s98_s24  ;;  %s109_s26 = int_to_ptr.vmem [resolvable:$true] %s108_s26 }
  0x1f   :  { %v74_v4 = vmul.f32 %v71_v2, %v69_v0  ;;  %v80_v5 = vadd.f32 %v71_v2, %v69_v0  ;;  %v75_v6 = vmul.f32 %v72_v3, %v70_v1  ;;  %v81_v7 = vadd.f32 %v72_v3, %v70_v1  ;;  %s172_s1 = scalar_lea.vmem %s99_s24, 128  ;;  %p177_p11 = scmp.lt.s32.totalorder %s99_s24, %s99_s24 }
  0x20   :  { %p173_p10 = scmp.ne.s32.totalorder %s99_s24, %s172_s1  ;;  %p178_p12 = scmp.lt.s32.totalorder %s172_s1, %s172_s1 }
  0x21   :  { %v76_v8 = vadd.f32 %v75_v6, %v74_v4  ;;  %v82_v9 = vadd.f32 %v81_v7, %v80_v5 }
  0x22   :  { %p179_p13 = por %p178_p12, %p177_p11 }
  0x23   :  { %89 = vst [vmem:[#allocation9] sm:$0xff] %v76_v8  ;;  %91 = vst [vmem:[#allocation10] sm:$0xff] %v82_v9 }
  0x24   :  { %p180_p0 = pnand %p179_p13, %p173_p10 }
  0x26   :  { %183 = shalt.err (!%p180_p0)
}
  0x27   :  { %101 = dma.vmem_to_hbm [thread:$0]  %s99_s24, 128, %s260_s2, [#allocation6]  }
  0x28   :  { %s192_s29 = scalar_lea.vmem %s109_s26, 128  ;;  %p197_p2 = scmp.lt.s32.totalorder %s109_s26, %s109_s26 }
  0x29   :  { %p193_p1 = scmp.ne.s32.totalorder %s109_s26, %s192_s29  ;;  %p198_p3 = scmp.lt.s32.totalorder %s192_s29, %s192_s29 }
  0x2b   :  { %p199_p4 = por %p198_p3, %p197_p2 }
  0x2d   :  { %p200_p5 = pnand %p199_p4, %p193_p1 }
  0x2f   :  { %203 = shalt.err (!%p200_p5)
}
  0x30   :  { %111 = dma.vmem_to_hbm [thread:$0]  %s109_s26, 128, %s261_s3, [#allocation11]  }
  0x31   :  { %216 = dma.done.wait [#allocation6], 128  }
  0x32   :  { %217 = vsyncadd [#allocation6], 4294967168 }
  0x33   :  { %218 = dma.done.wait [#allocation11], 128  }
  0x34   :  { %219 = vsyncadd [#allocation11], 4294967168 }
  0x35   :  { %118 = vsyncpa [#allocation5], 1 }
  0x36   :  { %119 = vsyncpa [#allocation8], 1 }
  0x37   :  { %120 = vsyncpa [#allocation6], 1 }
  0x38   :  { %121 = vsyncpa [#allocation11], 1 }

</bundles_post_ra>
